<compile_context>
chip_gen: v6e
topology: v6e:2x2x1
jax: 0.10.0
libtpu: 0.0.40
codegen_flags: <defaults>
</compile_context>

<pallas_src>
import functools

import jax
import jax.numpy as jnp
from jax.experimental import pallas as pl
from jax.experimental.pallas import tpu as pltpu


# ---------------- deterministic small config ----------------
class Config:
    stage_size = (16, 16)                                   # global map H, W
    global_conv_setting = [(4, 8, 3, 2), (8, 8, 3, 2)]       # (in, out, kernel, stride)
    local_map_size = 8
    local_conv_setting = [(4, 8, 3, 2)]
    hidden_size = 32
    rnn_type = "GRU"
    rnn_hidden_size = 32
    rnn_layer_size = 1
    dropout = 0.0


CFG = Config()
_VMEM = pl.BlockSpec(memory_space=pltpu.MemorySpace.VMEM)


def _dot(a, b):
    return jnp.dot(a, b, preferred_element_type=jnp.float32)


# ---------------- conv block kernel (fused matmul + bias + ReLU, lane-dense output) ------
def _conv_kernel(p_ref, w_ref, b_ref, o_ref):
    """o = relu(w @ p + b);  w:(O, C*k*k)  p:(C*k*k, M)  b:(O,1)  o:(O, M)."""
    y = _dot(w_ref[...], p_ref[...]) + b_ref[...]
    o_ref[...] = jnp.maximum(y, 0.0).astype(o_ref.dtype)


def conv_block(x_cnhw, wmat, b2, k, stride):
    """x:(C,N,H,W) float32; wmat:(O, C*k*k); b2:(O,1). Returns (O, N, Ho, Wo)."""
    pad = k // 2
    xp = jnp.pad(x_cnhw, ((0, 0), (0, 0), (pad, pad), (pad, pad)), mode="edge")  # ReplicationPad2d
    C, N, Hp, Wp = xp.shape
    Ho = (Hp - k) // stride + 1
    Wo = (Wp - k) // stride + 1
    # TODO(synk): im2col patch extraction stays as XLA glue (one fusion of k*k strided
    # slices); a strided gather has no robust in-kernel Mosaic lowering at these shapes.
    views = [xp[:, :, i:i + stride * Ho:stride, j:j + stride * Wo:stride]
             for i in range(k) for j in range(k)]
    patches = jnp.stack(views, axis=1).reshape(C * k * k, N * Ho * Wo)
    out_ch = wmat.shape[0]
    y = pl.pallas_call(
        _conv_kernel,
        out_shape=jax.ShapeDtypeStruct((out_ch, N * Ho * Wo), jnp.float32),
        in_specs=[_VMEM, _VMEM, _VMEM],
        out_specs=_VMEM,
    )(patches, wmat, b2)
    return y.reshape(out_ch, N, Ho, Wo)


# ---------------- fused post-conv network kernel ----------------
def _head_kernel(*refs, num_layers):
    """One kernel for: global/local hidden linears + ReLU, GRU layer(s), hidden_a/c, heads.

    Ref order (inputs): gfeat, lfeat, h0, Wg, bg, Wl, bl,
      per GRU layer 0: Wxr_g, Wxr_l, Whr, br, Wxz_g, Wxz_l, Whz, bz, Wxn_g, Wxn_l, Whn, bnx, bnh
      per GRU layer>0: Wxr, Whr, br, Wxz, Whz, bz, Wxn, Whn, bnx, bnh
      heads: Wha, bha, Whc, bhc, Wmu, bmu, Wsig, bsig, Wval, bval
    Ref order (outputs): mu, sigma, val, next_h
    """
    it = iter(refs)

    def nxt():
        return next(it)[...]

    gf = nxt()
    lf = nxt()
    h0_ref = next(it)
    wg = nxt(); bg = nxt()
    wl = nxt(); bl = nxt()

    # global_hidden / local_hidden + ReLU  (relu(cat(a,b)) == cat(relu(a), relu(b)))
    xg = jnp.maximum(_dot(gf, wg) + bg, 0.0)
    xl = jnp.maximum(_dot(lf, wl) + bl, 0.0)

    h_states = []
    layer_in = None
    for layer in range(num_layers):
        h_prev = h0_ref[layer]
        if layer == 0:
            wxr_g = nxt(); wxr_l = nxt(); whr = nxt(); br = nxt()
            wxz_g = nxt(); wxz_l = nxt(); whz = nxt(); bz = nxt()
            wxn_g = nxt(); wxn_l = nxt(); whn = nxt(); bnx = nxt(); bnh = nxt()
            ir = _dot(xg, wxr_g) + _dot(xl, wxr_l)
            iz = _dot(xg, wxz_g) + _dot(xl, wxz_l)
            i_n = _dot(xg, wxn_g) + _dot(xl, wxn_l)
        else:
            wxr = nxt(); whr = nxt(); br = nxt()
            wxz = nxt(); whz = nxt(); bz = nxt()
            wxn = nxt(); whn = nxt(); bnx = nxt(); bnh = nxt()
            ir = _dot(layer_in, wxr)
            iz = _dot(layer_in, wxz)
            i_n = _dot(layer_in, wxn)
        # PyTorch GRU: r, z, n gate order; n = tanh(W_in x + b_in + r*(W_hn h + b_hn))
        r = jax.nn.sigmoid(ir + _dot(h_prev, whr) + br)
        z = jax.nn.sigmoid(iz + _dot(h_prev, whz) + bz)
        n = jnp.tanh(i_n + bnx + r * (_dot(h_prev, whn) + bnh))
        h_new = (1.0 - z) * n + z * h_prev
        h_states.append(h_new)
        layer_in = h_new
        # TODO(synk): inter-layer dropout not implemented (cfg.dropout == 0).

    wha = nxt(); bha = nxt()
    whc = nxt(); bhc = nxt()
    wmu = nxt(); bmu = nxt()
    wsig = nxt(); bsig = nxt()
    wval = nxt(); bval = nxt()

    mu_ref = next(it)
    sig_ref = next(it)
    val_ref = next(it)
    nh_ref = next(it)

    ha = jnp.maximum(_dot(layer_in, wha) + bha, 0.0)
    hc = jnp.maximum(_dot(layer_in, whc) + bhc, 0.0)
    mu_ref[...] = (_dot(ha, wmu) + bmu).astype(mu_ref.dtype)
    sig_ref[...] = (jax.nn.sigmoid(_dot(ha, wsig) + bsig) + 1e-5).astype(sig_ref.dtype)
    val_ref[...] = (_dot(hc, wval) + bval).astype(val_ref.dtype)
    for layer in range(num_layers):
        nh_ref[layer] = h_states[layer].astype(nh_ref.dtype)


# ---------------- parameter init (deterministic, PyTorch-style uniform) ----------------
def _uniform(key, shape, bound):
    return jax.random.uniform(key, shape, jnp.float32, -bound, bound)


def _linear_params(key, fan_in, fan_out):
    k1, k2 = jax.random.split(key)
    bound = 1.0 / (fan_in ** 0.5)
    # stored pre-transposed (fan_in, fan_out) and bias as a (1, fan_out) row
    return (_uniform(k1, (fan_in, fan_out), bound),
            _uniform(k2, (fan_out,), bound).reshape(1, fan_out))


def _size_out(size, k, st):
    return (size - k + 2 * (k // 2)) // st + 1


def init_params(key, cfg):
    keys = iter(jax.random.split(key, 64))
    p = {}

    def conv_stack(settings):
        blocks = []
        for (cin, cout, k, st) in settings:
            bound = 1.0 / ((cin * k * k) ** 0.5)
            w = _uniform(next(keys), (cout, cin, k, k), bound)
            b = _uniform(next(keys), (cout,), bound)
            # pre-reshaped: (O, C*k*k) matmul weight, (O, 1) bias column
            blocks.append((w.reshape(cout, cin * k * k), b.reshape(cout, 1)))
        return blocks

    p["global_conv"] = conv_stack(cfg.global_conv_setting)
    p["local_conv"] = conv_stack(cfg.local_conv_setting)

    gh, gw = cfg.stage_size
    for (_, _, k, st) in cfg.global_conv_setting:
        gh, gw = _size_out(gh, k, st), _size_out(gw, k, st)
    p["global_hidden"] = _linear_params(
        next(keys), gh * gw * cfg.global_conv_setting[-1][1], cfg.hidden_size // 2)

    lh = lw = cfg.local_map_size
    for (_, _, k, st) in cfg.local_conv_setting:
        lh, lw = _size_out(lh, k, st), _size_out(lw, k, st)
    p["local_hidden"] = _linear_params(
        next(keys), lh * lw * cfg.local_conv_setting[-1][1], cfg.hidden_size // 2)

    # GRU: drawn in PyTorch layout, then pre-split per gate (and per global/local half
    # for layer 0) and pre-transposed so the kernel does no slicing/transposing.
    H = cfg.rnn_hidden_size
    half = cfg.hidden_size // 2
    bound = 1.0 / (H ** 0.5)
    p["rnn"] = []
    for layer in range(cfg.rnn_layer_size):
        in_sz = cfg.hidden_size if layer == 0 else H
        w_ih = _uniform(next(keys), (3 * H, in_sz), bound)
        w_hh = _uniform(next(keys), (3 * H, H), bound)
        b_ih = _uniform(next(keys), (3 * H,), bound)
        b_hh = _uniform(next(keys), (3 * H,), bound)
        w_ir, w_iz, w_in = w_ih[:H], w_ih[H:2 * H], w_ih[2 * H:]
        w_hr, w_hz, w_hn = w_hh[:H], w_hh[H:2 * H], w_hh[2 * H:]
        b_r = (b_ih[:H] + b_hh[:H]).reshape(1, H)
        b_z = (b_ih[H:2 * H] + b_hh[H:2 * H]).reshape(1, H)
        b_nx = b_ih[2 * H:].reshape(1, H)
        b_nh = b_hh[2 * H:].reshape(1, H)
        if layer == 0:
            p["rnn"].append((
                w_ir[:, :half].T, w_ir[:, half:].T, w_hr.T, b_r,
                w_iz[:, :half].T, w_iz[:, half:].T, w_hz.T, b_z,
                w_in[:, :half].T, w_in[:, half:].T, w_hn.T, b_nx, b_nh,
            ))
        else:
            p["rnn"].append((
                w_ir.T, w_hr.T, b_r,
                w_iz.T, w_hz.T, b_z,
                w_in.T, w_hn.T, b_nx, b_nh,
            ))

    p["hidden_a"] = _linear_params(next(keys), H, cfg.hidden_size)
    p["hidden_c"] = _linear_params(next(keys), H, cfg.hidden_size)
    p["mu"] = _linear_params(next(keys), cfg.hidden_size, 2)
    p["sigma"] = _linear_params(next(keys), cfg.hidden_size, 2)
    p["val"] = _linear_params(next(keys), cfg.hidden_size, 1)
    return p


# ---------------- forward ----------------
def model_forward(params, s_global, s_local, h0):
    N = s_global.shape[0]
    L, _, H = h0.shape

    # Conv stacks run in (C, N, H, W) layout so every conv kernel output is lane-dense.
    x = jnp.transpose(s_global, (1, 0, 2, 3))
    for (wmat, b2), (_, _, k, st) in zip(params["global_conv"], CFG.global_conv_setting):
        x = conv_block(x, wmat, b2, k, st)
    gfeat = jnp.transpose(x, (1, 0, 2, 3)).reshape(N, -1)   # PyTorch Flatten order (N, C*H*W)

    x = jnp.transpose(s_local, (1, 0, 2, 3))
    for (wmat, b2), (_, _, k, st) in zip(params["local_conv"], CFG.local_conv_setting):
        x = conv_block(x, wmat, b2, k, st)
    lfeat = jnp.transpose(x, (1, 0, 2, 3)).reshape(N, -1)

    # Single fused kernel for the entire post-conv network.
    args = [gfeat, lfeat, h0,
            params["global_hidden"][0], params["global_hidden"][1],
            params["local_hidden"][0], params["local_hidden"][1]]
    for layer_params in params["rnn"]:
        args.extend(layer_params)
    for name in ("hidden_a", "hidden_c", "mu", "sigma", "val"):
        args.extend(params[name])

    out_shapes = (
        jax.ShapeDtypeStruct((N, 2), jnp.float32),          # mu
        jax.ShapeDtypeStruct((N, 2), jnp.float32),          # sigma
        jax.ShapeDtypeStruct((N, 1), jnp.float32),          # val
        jax.ShapeDtypeStruct((L, N, H), jnp.float32),       # next_h
    )
    mu, sigma, val, next_h = pl.pallas_call(
        functools.partial(_head_kernel, num_layers=L),
        out_shape=out_shapes,
        in_specs=[_VMEM] * len(args),
        out_specs=(_VMEM, _VMEM, _VMEM, _VMEM),
        input_output_aliases={2: 3},                         # h0 -> next_h in place
    )(*args)
    return mu, sigma, val, next_h


# ---------------- main ----------------
if __name__ == "__main__":
    key = jax.random.PRNGKey(0)
    pkey, dkey = jax.random.split(key)
    params = init_params(pkey, CFG)

    N = 2
    kg, kl = jax.random.split(dkey)
    s_global = jax.random.normal(kg, (N, CFG.global_conv_setting[0][0],
                                      CFG.stage_size[0], CFG.stage_size[1]), jnp.float32)
    s_local = jax.random.normal(kl, (N, CFG.local_conv_setting[0][0],
                                     CFG.local_map_size, CFG.local_map_size), jnp.float32)
    h0 = jnp.zeros((CFG.rnn_layer_size, N, CFG.rnn_hidden_size), jnp.float32)

    fwd = jax.jit(model_forward)
    mu, sigma, val, next_h = fwd(params, s_global, s_local, h0)
    jax.block_until_ready((mu, sigma, val, next_h))

    assert mu.shape == (N, 2)
    assert sigma.shape == (N, 2)
    assert val.shape == (N, 1)
    assert next_h.shape == (CFG.rnn_layer_size, N, CFG.rnn_hidden_size)
    assert bool(jnp.all(jnp.isfinite(mu))) and bool(jnp.all(sigma > 0))
    assert bool(jnp.all(jnp.isfinite(next_h)))
    print("KERNEL_OK")
</pallas_src>

<mosaic_0001>
module attributes {stable_mosaic.version = 11 : i64} {
  func.func @_conv_kernel(%arg0: memref<36x128xf32, #tpu.memory_space<vmem>>, %arg1: memref<8x36xf32, #tpu.memory_space<vmem>>, %arg2: memref<8x1xf32, #tpu.memory_space<vmem>>, %arg3: memref<8x128xf32, #tpu.memory_space<vmem>>) attributes {dimension_semantics = [], scalar_prefetch = 0 : i64, scratch_operands = 0 : i64, tpu.core_type = #tpu.core_type<tc>} {
    %c0 = arith.constant 0 : index
    %c0_0 = arith.constant 0 : index
    %0 = vector.load %arg1[%c0, %c0_0] : memref<8x36xf32, #tpu.memory_space<vmem>>, vector<8x36xf32>
    %c0_1 = arith.constant 0 : index
    %c0_2 = arith.constant 0 : index
    %1 = vector.load %arg0[%c0_1, %c0_2] : memref<36x128xf32, #tpu.memory_space<vmem>>, vector<36x128xf32>
    %cst = arith.constant dense<0.000000e+00> : vector<8x128xf32>
    %2 = tpu.matmul %0, %1, %cst {dimension_numbers = #tpu.dot_dimension_numbers<[1], [0], [0], [1], [0, 0, 1, 1], [], []>} : vector<8x36xf32>, vector<36x128xf32>, vector<8x128xf32> -> vector<8x128xf32>
    %c0_3 = arith.constant 0 : index
    %c0_4 = arith.constant 0 : index
    %3 = vector.load %arg2[%c0_3, %c0_4] : memref<8x1xf32, #tpu.memory_space<vmem>>, vector<8x1xf32>
    %4 = vector.broadcast %3 : vector<8x1xf32> to vector<8x128xf32>
    %5 = arith.addf %2, %4 : vector<8x128xf32>
    %cst_5 = arith.constant 0.000000e+00 : f32
    %6 = vector.broadcast %cst_5 : f32 to vector<8x128xf32>
    %7 = arith.maximumf %5, %6 : vector<8x128xf32>
    %c0_6 = arith.constant 0 : index
    %c0_7 = arith.constant 0 : index
    %8 = vector.load %arg3[%c0_6, %c0_7] : memref<8x128xf32, #tpu.memory_space<vmem>>, vector<8x128xf32>
    tpu.vector_store %arg3[%c0_6, %c0_7], %7 {strides = array<i32>} : memref<8x128xf32, #tpu.memory_space<vmem>>, vector<8x128xf32>,
    return
  }
}

module attributes {stable_mosaic.version = 11 : i64} {
  func.func @_conv_kernel(%arg0: memref<72x32xf32, #tpu.memory_space<vmem>>, %arg1: memref<8x72xf32, #tpu.memory_space<vmem>>, %arg2: memref<8x1xf32, #tpu.memory_space<vmem>>, %arg3: memref<8x32xf32, #tpu.memory_space<vmem>>) attributes {dimension_semantics = [], scalar_prefetch = 0 : i64, scratch_operands = 0 : i64, tpu.core_type = #tpu.core_type<tc>} {
    %c0 = arith.constant 0 : index
    %c0_0 = arith.constant 0 : index
    %0 = vector.load %arg1[%c0, %c0_0] : memref<8x72xf32, #tpu.memory_space<vmem>>, vector<8x72xf32>
    %c0_1 = arith.constant 0 : index
    %c0_2 = arith.constant 0 : index
    %1 = vector.load %arg0[%c0_1, %c0_2] : memref<72x32xf32, #tpu.memory_space<vmem>>, vector<72x32xf32>
    %cst = arith.constant dense<0.000000e+00> : vector<8x32xf32>
    %2 = tpu.matmul %0, %1, %cst {dimension_numbers = #tpu.dot_dimension_numbers<[1], [0], [0], [1], [0, 0, 1, 1], [], []>} : vector<8x72xf32>, vector<72x32xf32>, vector<8x32xf32> -> vector<8x32xf32>
    %c0_3 = arith.constant 0 : index
    %c0_4 = arith.constant 0 : index
    %3 = vector.load %arg2[%c0_3, %c0_4] : memref<8x1xf32, #tpu.memory_space<vmem>>, vector<8x1xf32>
    %4 = vector.broadcast %3 : vector<8x1xf32> to vector<8x32xf32>
    %5 = arith.addf %2, %4 : vector<8x32xf32>
    %cst_5 = arith.constant 0.000000e+00 : f32
    %6 = vector.broadcast %cst_5 : f32 to vector<8x32xf32>
    %7 = arith.maximumf %5, %6 : vector<8x32xf32>
    %c0_6 = arith.constant 0 : index
    %c0_7 = arith.constant 0 : index
    %8 = vector.load %arg3[%c0_6, %c0_7] : memref<8x32xf32, #tpu.memory_space<vmem>>, vector<8x32xf32>
    tpu.vector_store %arg3[%c0_6, %c0_7], %7 {strides = array<i32>} : memref<8x32xf32, #tpu.memory_space<vmem>>, vector<8x32xf32>,
    return
  }
}

module attributes {stable_mosaic.version = 11 : i64} {
  func.func @_conv_kernel(%arg0: memref<36x32xf32, #tpu.memory_space<vmem>>, %arg1: memref<8x36xf32, #tpu.memory_space<vmem>>, %arg2: memref<8x1xf32, #tpu.memory_space<vmem>>, %arg3: memref<8x32xf32, #tpu.memory_space<vmem>>) attributes {dimension_semantics = [], scalar_prefetch = 0 : i64, scratch_operands = 0 : i64, tpu.core_type = #tpu.core_type<tc>} {
    %c0 = arith.constant 0 : index
    %c0_0 = arith.constant 0 : index
    %0 = vector.load %arg1[%c0, %c0_0] : memref<8x36xf32, #tpu.memory_space<vmem>>, vector<8x36xf32>
    %c0_1 = arith.constant 0 : index
    %c0_2 = arith.constant 0 : index
    %1 = vector.load %arg0[%c0_1, %c0_2] : memref<36x32xf32, #tpu.memory_space<vmem>>, vector<36x32xf32>
    %cst = arith.constant dense<0.000000e+00> : vector<8x32xf32>
    %2 = tpu.matmul %0, %1, %cst {dimension_numbers = #tpu.dot_dimension_numbers<[1], [0], [0], [1], [0, 0, 1, 1], [], []>} : vector<8x36xf32>, vector<36x32xf32>, vector<8x32xf32> -> vector<8x32xf32>
    %c0_3 = arith.constant 0 : index
    %c0_4 = arith.constant 0 : index
    %3 = vector.load %arg2[%c0_3, %c0_4] : memref<8x1xf32, #tpu.memory_space<vmem>>, vector<8x1xf32>
    %4 = vector.broadcast %3 : vector<8x1xf32> to vector<8x32xf32>
    %5 = arith.addf %2, %4 : vector<8x32xf32>
    %cst_5 = arith.constant 0.000000e+00 : f32
    %6 = vector.broadcast %cst_5 : f32 to vector<8x32xf32>
    %7 = arith.maximumf %5, %6 : vector<8x32xf32>
    %c0_6 = arith.constant 0 : index
    %c0_7 = arith.constant 0 : index
    %8 = vector.load %arg3[%c0_6, %c0_7] : memref<8x32xf32, #tpu.memory_space<vmem>>, vector<8x32xf32>
    tpu.vector_store %arg3[%c0_6, %c0_7], %7 {strides = array<i32>} : memref<8x32xf32, #tpu.memory_space<vmem>>, vector<8x32xf32>,
    return
  }
}

module attributes {stable_mosaic.version = 11 : i64} {
  func.func @_head_kernel(%arg0: memref<2x128xf32, #tpu.memory_space<vmem>>, %arg1: memref<2x128xf32, #tpu.memory_space<vmem>>, %arg2: memref<1x2x32xf32, #tpu.memory_space<vmem>>, %arg3: memref<128x16xf32, #tpu.memory_space<vmem>>, %arg4: memref<1x16xf32, #tpu.memory_space<vmem>>, %arg5: memref<128x16xf32, #tpu.memory_space<vmem>>, %arg6: memref<1x16xf32, #tpu.memory_space<vmem>>, %arg7: memref<16x32xf32, #tpu.memory_space<vmem>>, %arg8: memref<16x32xf32, #tpu.memory_space<vmem>>, %arg9: memref<32x32xf32, #tpu.memory_space<vmem>>, %arg10: memref<1x32xf32, #tpu.memory_space<vmem>>, %arg11: memref<16x32xf32, #tpu.memory_space<vmem>>, %arg12: memref<16x32xf32, #tpu.memory_space<vmem>>, %arg13: memref<32x32xf32, #tpu.memory_space<vmem>>, %arg14: memref<1x32xf32, #tpu.memory_space<vmem>>, %arg15: memref<16x32xf32, #tpu.memory_space<vmem>>, %arg16: memref<16x32xf32, #tpu.memory_space<vmem>>, %arg17: memref<32x32xf32, #tpu.memory_space<vmem>>, %arg18: memref<1x32xf32, #tpu.memory_space<vmem>>, %arg19: memref<1x32xf32, #tpu.memory_space<vmem>>, %arg20: memref<32x32xf32, #tpu.memory_space<vmem>>, %arg21: memref<1x32xf32, #tpu.memory_space<vmem>>, %arg22: memref<32x32xf32, #tpu.memory_space<vmem>>, %arg23: memref<1x32xf32, #tpu.memory_space<vmem>>, %arg24: memref<32x2xf32, #tpu.memory_space<vmem>>, %arg25: memref<1x2xf32, #tpu.memory_space<vmem>>, %arg26: memref<32x2xf32, #tpu.memory_space<vmem>>, %arg27: memref<1x2xf32, #tpu.memory_space<vmem>>, %arg28: memref<32x1xf32, #tpu.memory_space<vmem>>, %arg29: memref<1x1xf32, #tpu.memory_space<vmem>>, %arg30: memref<2x2xf32, #tpu.memory_space<vmem>>, %arg31: memref<2x2xf32, #tpu.memory_space<vmem>>, %arg32: memref<2x1xf32, #tpu.memory_space<vmem>>, %arg33: memref<1x2x32xf32, #tpu.memory_space<vmem>>) attributes {dimension_semantics = [], scalar_prefetch = 0 : i64, scratch_operands = 0 : i64, tpu.core_type = #tpu.core_type<tc>} {
    %c0 = arith.constant 0 : index
    %c0_0 = arith.constant 0 : index
    %0 = vector.load %arg0[%c0, %c0_0] : memref<2x128xf32, #tpu.memory_space<vmem>>, vector<2x128xf32>
    %c0_1 = arith.constant 0 : index
    %c0_2 = arith.constant 0 : index
    %1 = vector.load %arg1[%c0_1, %c0_2] : memref<2x128xf32, #tpu.memory_space<vmem>>, vector<2x128xf32>
    %c0_3 = arith.constant 0 : index
    %c0_4 = arith.constant 0 : index
    %2 = vector.load %arg3[%c0_3, %c0_4] : memref<128x16xf32, #tpu.memory_space<vmem>>, vector<128x16xf32>
    %c0_5 = arith.constant 0 : index
    %c0_6 = arith.constant 0 : index
    %3 = vector.load %arg4[%c0_5, %c0_6] : memref<1x16xf32, #tpu.memory_space<vmem>>, vector<1x16xf32>
    %c0_7 = arith.constant 0 : index
    %c0_8 = arith.constant 0 : index
    %4 = vector.load %arg5[%c0_7, %c0_8] : memref<128x16xf32, #tpu.memory_space<vmem>>, vector<128x16xf32>
    %c0_9 = arith.constant 0 : index
    %c0_10 = arith.constant 0 : index
    %5 = vector.load %arg6[%c0_9, %c0_10] : memref<1x16xf32, #tpu.memory_space<vmem>>, vector<1x16xf32>
    %cst = arith.constant dense<0.000000e+00> : vector<2x16xf32>
    %6 = tpu.matmul %0, %2, %cst {dimension_numbers = #tpu.dot_dimension_numbers<[1], [0], [0], [1], [0, 0, 1, 1], [], []>} : vector<2x128xf32>, vector<128x16xf32>, vector<2x16xf32> -> vector<2x16xf32>
    %7 = vector.broadcast %3 : vector<1x16xf32> to vector<2x16xf32>
    %8 = arith.addf %6, %7 : vector<2x16xf32>
    %cst_11 = arith.constant 0.000000e+00 : f32
    %9 = vector.broadcast %cst_11 : f32 to vector<2x16xf32>
    %10 = arith.maximumf %8, %9 : vector<2x16xf32>
    %cst_12 = arith.constant dense<0.000000e+00> : vector<2x16xf32>
    %11 = tpu.matmul %1, %4, %cst_12 {dimension_numbers = #tpu.dot_dimension_numbers<[1], [0], [0], [1], [0, 0, 1, 1], [], []>} : vector<2x128xf32>, vector<128x16xf32>, vector<2x16xf32> -> vector<2x16xf32>
    %12 = vector.broadcast %5 : vector<1x16xf32> to vector<2x16xf32>
    %13 = arith.addf %11, %12 : vector<2x16xf32>
    %cst_13 = arith.constant 0.000000e+00 : f32
    %14 = vector.broadcast %cst_13 : f32 to vector<2x16xf32>
    %15 = arith.maximumf %13, %14 : vector<2x16xf32>
    %c0_14 = arith.constant 0 : index
    %c0_15 = arith.constant 0 : index
    %c0_16 = arith.constant 0 : index
    %16 = vector.load %arg2[%c0_14, %c0_15, %c0_16] : memref<1x2x32xf32, #tpu.memory_space<vmem>>, vector<1x2x32xf32>
    %17 = vector.shape_cast %16 : vector<1x2x32xf32> to vector<2x32xf32>
    %c0_17 = arith.constant 0 : index
    %c0_18 = arith.constant 0 : index
    %18 = vector.load %arg7[%c0_17, %c0_18] : memref<16x32xf32, #tpu.memory_space<vmem>>, vector<16x32xf32>
    %c0_19 = arith.constant 0 : index
    %c0_20 = arith.constant 0 : index
    %19 = vector.load %arg8[%c0_19, %c0_20] : memref<16x32xf32, #tpu.memory_space<vmem>>, vector<16x32xf32>
    %c0_21 = arith.constant 0 : index
    %c0_22 = arith.constant 0 : index
    %20 = vector.load %arg9[%c0_21, %c0_22] : memref<32x32xf32, #tpu.memory_space<vmem>>, vector<32x32xf32>
    %c0_23 = arith.constant 0 : index
    %c0_24 = arith.constant 0 : index
    %21 = vector.load %arg10[%c0_23, %c0_24] : memref<1x32xf32, #tpu.memory_space<vmem>>, vector<1x32xf32>
    %c0_25 = arith.constant 0 : index
    %c0_26 = arith.constant 0 : index
    %22 = vector.load %arg11[%c0_25, %c0_26] : memref<16x32xf32, #tpu.memory_space<vmem>>, vector<16x32xf32>
    %c0_27 = arith.constant 0 : index
    %c0_28 = arith.constant 0 : index
    %23 = vector.load %arg12[%c0_27, %c0_28] : memref<16x32xf32, #tpu.memory_space<vmem>>, vector<16x32xf32>
    %c0_29 = arith.constant 0 : index
    %c0_30 = arith.constant 0 : index
    %24 = vector.load %arg13[%c0_29, %c0_30] : memref<32x32xf32, #tpu.memory_space<vmem>>, vector<32x32xf32>
    %c0_31 = arith.constant 0 : index
    %c0_32 = arith.constant 0 : index
    %25 = vector.load %arg14[%c0_31, %c0_32] : memref<1x32xf32, #tpu.memory_space<vmem>>, vector<1x32xf32>
    %c0_33 = arith.constant 0 : index
    %c0_34 = arith.constant 0 : index
    %26 = vector.load %arg15[%c0_33, %c0_34] : memref<16x32xf32, #tpu.memory_space<vmem>>, vector<16x32xf32>
    %c0_35 = arith.constant 0 : index
    %c0_36 = arith.constant 0 : index
    %27 = vector.load %arg16[%c0_35, %c0_36] : memref<16x32xf32, #tpu.memory_space<vmem>>, vector<16x32xf32>
    %c0_37 = arith.constant 0 : index
    %c0_38 = arith.constant 0 : index
    %28 = vector.load %arg17[%c0_37, %c0_38] : memref<32x32xf32, #tpu.memory_space<vmem>>, vector<32x32xf32>
    %c0_39 = arith.constant 0 : index
    %c0_40 = arith.constant 0 : index
    %29 = vector.load %arg18[%c0_39, %c0_40] : memref<1x32xf32, #tpu.memory_space<vmem>>, vector<1x32xf32>
    %c0_41 = arith.constant 0 : index
    %c0_42 = arith.constant 0 : index
    %30 = vector.load %arg19[%c0_41, %c0_42] : memref<1x32xf32, #tpu.memory_space<vmem>>, vector<1x32xf32>
    %cst_43 = arith.constant dense<0.000000e+00> : vector<2x32xf32>
    %31 = tpu.matmul %10, %18, %cst_43 {dimension_numbers = #tpu.dot_dimension_numbers<[1], [0], [0], [1], [0, 0, 1, 1], [], []>} : vector<2x16xf32>, vector<16x32xf32>, vector<2x32xf32> -> vector<2x32xf32>
    %cst_44 = arith.constant dense<0.000000e+00> : vector<2x32xf32>
    %32 = tpu.matmul %15, %19, %cst_44 {dimension_numbers = #tpu.dot_dimension_numbers<[1], [0], [0], [1], [0, 0, 1, 1], [], []>} : vector<2x16xf32>, vector<16x32xf32>, vector<2x32xf32> -> vector<2x32xf32>
    %33 = arith.addf %31, %32 : vector<2x32xf32>
    %cst_45 = arith.constant dense<0.000000e+00> : vector<2x32xf32>
    %34 = tpu.matmul %10, %22, %cst_45 {dimension_numbers = #tpu.dot_dimension_numbers<[1], [0], [0], [1], [0, 0, 1, 1], [], []>} : vector<2x16xf32>, vector<16x32xf32>, vector<2x32xf32> -> vector<2x32xf32>
    %cst_46 = arith.constant dense<0.000000e+00> : vector<2x32xf32>
    %35 = tpu.matmul %15, %23, %cst_46 {dimension_numbers = #tpu.dot_dimension_numbers<[1], [0], [0], [1], [0, 0, 1, 1], [], []>} : vector<2x16xf32>, vector<16x32xf32>, vector<2x32xf32> -> vector<2x32xf32>
    %36 = arith.addf %34, %35 : vector<2x32xf32>
    %cst_47 = arith.constant dense<0.000000e+00> : vector<2x32xf32>
    %37 = tpu.matmul %10, %26, %cst_47 {dimension_numbers = #tpu.dot_dimension_numbers<[1], [0], [0], [1], [0, 0, 1, 1], [], []>} : vector<2x16xf32>, vector<16x32xf32>, vector<2x32xf32> -> vector<2x32xf32>
    %cst_48 = arith.constant dense<0.000000e+00> : vector<2x32xf32>
    %38 = tpu.matmul %15, %27, %cst_48 {dimension_numbers = #tpu.dot_dimension_numbers<[1], [0], [0], [1], [0, 0, 1, 1], [], []>} : vector<2x16xf32>, vector<16x32xf32>, vector<2x32xf32> -> vector<2x32xf32>
    %39 = arith.addf %37, %38 : vector<2x32xf32>
    %cst_49 = arith.constant dense<0.000000e+00> : vector<2x32xf32>
    %40 = tpu.matmul %17, %20, %cst_49 {dimension_numbers = #tpu.dot_dimension_numbers<[1], [0], [0], [1], [0, 0, 1, 1], [], []>} : vector<2x32xf32>, vector<32x32xf32>, vector<2x32xf32> -> vector<2x32xf32>
    %41 = arith.addf %33, %40 : vector<2x32xf32>
    %42 = vector.broadcast %21 : vector<1x32xf32> to vector<2x32xf32>
    %43 = arith.addf %41, %42 : vector<2x32xf32>
    %44 = arith.negf %43 : vector<2x32xf32>
    %45 = math.exp %44 : vector<2x32xf32>
    %cst_50 = arith.constant 1.000000e+00 : f32
    %46 = vector.broadcast %cst_50 : f32 to vector<2x32xf32>
    %47 = arith.addf %46, %45 : vector<2x32xf32>
    %48 = arith.divf %46, %47 : vector<2x32xf32>
    %cst_51 = arith.constant dense<0.000000e+00> : vector<2x32xf32>
    %49 = tpu.matmul %17, %24, %cst_51 {dimension_numbers = #tpu.dot_dimension_numbers<[1], [0], [0], [1], [0, 0, 1, 1], [], []>} : vector<2x32xf32>, vector<32x32xf32>, vector<2x32xf32> -> vector<2x32xf32>
    %50 = arith.addf %36, %49 : vector<2x32xf32>
    %51 = vector.broadcast %25 : vector<1x32xf32> to vector<2x32xf32>
    %52 = arith.addf %50, %51 : vector<2x32xf32>
    %53 = arith.negf %52 : vector<2x32xf32>
    %54 = math.exp %53 : vector<2x32xf32>
    %cst_52 = arith.constant 1.000000e+00 : f32
    %55 = vector.broadcast %cst_52 : f32 to vector<2x32xf32>
    %56 = arith.addf %55, %54 : vector<2x32xf32>
    %57 = arith.divf %55, %56 : vector<2x32xf32>
    %58 = vector.broadcast %29 : vector<1x32xf32> to vector<2x32xf32>
    %59 = arith.addf %39, %58 : vector<2x32xf32>
    %cst_53 = arith.constant dense<0.000000e+00> : vector<2x32xf32>
    %60 = tpu.matmul %17, %28, %cst_53 {dimension_numbers = #tpu.dot_dimension_numbers<[1], [0], [0], [1], [0, 0, 1, 1], [], []>} : vector<2x32xf32>, vector<32x32xf32>, vector<2x32xf32> -> vector<2x32xf32>
    %61 = vector.broadcast %30 : vector<1x32xf32> to vector<2x32xf32>
    %62 = arith.addf %60, %61 : vector<2x32xf32>
    %63 = arith.mulf %48, %62 : vector<2x32xf32>
    %64 = arith.addf %59, %63 : vector<2x32xf32>
    %65 = math.tanh %64 : vector<2x32xf32>
    %cst_54 = arith.constant 1.000000e+00 : f32
    %66 = vector.broadcast %cst_54 : f32 to vector<2x32xf32>
    %67 = arith.subf %66, %57 : vector<2x32xf32>
    %68 = arith.mulf %67, %65 : vector<2x32xf32>
    %69 = arith.mulf %57, %17 : vector<2x32xf32>
    %70 = arith.addf %68, %69 : vector<2x32xf32>
    %c0_55 = arith.constant 0 : index
    %c0_56 = arith.constant 0 : index
    %71 = vector.load %arg20[%c0_55, %c0_56] : memref<32x32xf32, #tpu.memory_space<vmem>>, vector<32x32xf32>
    %c0_57 = arith.constant 0 : index
    %c0_58 = arith.constant 0 : index
    %72 = vector.load %arg21[%c0_57, %c0_58] : memref<1x32xf32, #tpu.memory_space<vmem>>, vector<1x32xf32>
    %c0_59 = arith.constant 0 : index
    %c0_60 = arith.constant 0 : index
    %73 = vector.load %arg22[%c0_59, %c0_60] : memref<32x32xf32, #tpu.memory_space<vmem>>, vector<32x32xf32>
    %c0_61 = arith.constant 0 : index
    %c0_62 = arith.constant 0 : index
    %74 = vector.load %arg23[%c0_61, %c0_62] : memref<1x32xf32, #tpu.memory_space<vmem>>, vector<1x32xf32>
    %c0_63 = arith.constant 0 : index
    %c0_64 = arith.constant 0 : index
    %75 = vector.load %arg24[%c0_63, %c0_64] : memref<32x2xf32, #tpu.memory_space<vmem>>, vector<32x2xf32>
    %c0_65 = arith.constant 0 : index
    %c0_66 = arith.constant 0 : index
    %76 = vector.load %arg25[%c0_65, %c0_66] : memref<1x2xf32, #tpu.memory_space<vmem>>, vector<1x2xf32>
    %c0_67 = arith.constant 0 : index
    %c0_68 = arith.constant 0 : index
    %77 = vector.load %arg26[%c0_67, %c0_68] : memref<32x2xf32, #tpu.memory_space<vmem>>, vector<32x2xf32>
    %c0_69 = arith.constant 0 : index
    %c0_70 = arith.constant 0 : index
    %78 = vector.load %arg27[%c0_69, %c0_70] : memref<1x2xf32, #tpu.memory_space<vmem>>, vector<1x2xf32>
    %c0_71 = arith.constant 0 : index
    %c0_72 = arith.constant 0 : index
    %79 = vector.load %arg28[%c0_71, %c0_72] : memref<32x1xf32, #tpu.memory_space<vmem>>, vector<32x1xf32>
    %c0_73 = arith.constant 0 : index
    %c0_74 = arith.constant 0 : index
    %80 = vector.load %arg29[%c0_73, %c0_74] : memref<1x1xf32, #tpu.memory_space<vmem>>, vector<1x1xf32>
    %cst_75 = arith.constant dense<0.000000e+00> : vector<2x32xf32>
    %81 = tpu.matmul %70, %71, %cst_75 {dimension_numbers = #tpu.dot_dimension_numbers<[1], [0], [0], [1], [0, 0, 1, 1], [], []>} : vector<2x32xf32>, vector<32x32xf32>, vector<2x32xf32> -> vector<2x32xf32>
    %82 = vector.broadcast %72 : vector<1x32xf32> to vector<2x32xf32>
    %83 = arith.addf %81, %82 : vector<2x32xf32>
    %cst_76 = arith.constant 0.000000e+00 : f32
    %84 = vector.broadcast %cst_76 : f32 to vector<2x32xf32>
    %85 = arith.maximumf %83, %84 : vector<2x32xf32>
    %cst_77 = arith.constant dense<0.000000e+00> : vector<2x32xf32>
    %86 = tpu.matmul %70, %73, %cst_77 {dimension_numbers = #tpu.dot_dimension_numbers<[1], [0], [0], [1], [0, 0, 1, 1], [], []>} : vector<2x32xf32>, vector<32x32xf32>, vector<2x32xf32> -> vector<2x32xf32>
    %87 = vector.broadcast %74 : vector<1x32xf32> to vector<2x32xf32>
    %88 = arith.addf %86, %87 : vector<2x32xf32>
    %cst_78 = arith.constant 0.000000e+00 : f32
    %89 = vector.broadcast %cst_78 : f32 to vector<2x32xf32>
    %90 = arith.maximumf %88, %89 : vector<2x32xf32>
    %cst_79 = arith.constant dense<0.000000e+00> : vector<2x2xf32>
    %91 = tpu.matmul %85, %75, %cst_79 {dimension_numbers = #tpu.dot_dimension_numbers<[1], [0], [0], [1], [0, 0, 1, 1], [], []>} : vector<2x32xf32>, vector<32x2xf32>, vector<2x2xf32> -> vector<2x2xf32>
    %92 = vector.broadcast %76 : vector<1x2xf32> to vector<2x2xf32>
    %93 = arith.addf %91, %92 : vector<2x2xf32>
    %c0_80 = arith.constant 0 : index
    %c0_81 = arith.constant 0 : index
    %94 = vector.load %arg30[%c0_80, %c0_81] : memref<2x2xf32, #tpu.memory_space<vmem>>, vector<2x2xf32>
    tpu.vector_store %arg30[%c0_80, %c0_81], %93 {strides = array<i32>} : memref<2x2xf32, #tpu.memory_space<vmem>>, vector<2x2xf32>,
    %cst_82 = arith.constant dense<0.000000e+00> : vector<2x2xf32>
    %95 = tpu.matmul %85, %77, %cst_82 {dimension_numbers = #tpu.dot_dimension_numbers<[1], [0], [0], [1], [0, 0, 1, 1], [], []>} : vector<2x32xf32>, vector<32x2xf32>, vector<2x2xf32> -> vector<2x2xf32>
    %96 = vector.broadcast %78 : vector<1x2xf32> to vector<2x2xf32>
    %97 = arith.addf %95, %96 : vector<2x2xf32>
    %98 = arith.negf %97 : vector<2x2xf32>
    %99 = math.exp %98 : vector<2x2xf32>
    %cst_83 = arith.constant 1.000000e+00 : f32
    %100 = vector.broadcast %cst_83 : f32 to vector<2x2xf32>
    %101 = arith.addf %100, %99 : vector<2x2xf32>
    %102 = arith.divf %100, %101 : vector<2x2xf32>
    %cst_84 = arith.constant 9.99999974E-6 : f32
    %103 = vector.broadcast %cst_84 : f32 to vector<2x2xf32>
    %104 = arith.addf %102, %103 : vector<2x2xf32>
    %c0_85 = arith.constant 0 : index
    %c0_86 = arith.constant 0 : index
    %105 = vector.load %arg31[%c0_85, %c0_86] : memref<2x2xf32, #tpu.memory_space<vmem>>, vector<2x2xf32>
    tpu.vector_store %arg31[%c0_85, %c0_86], %104 {strides = array<i32>} : memref<2x2xf32, #tpu.memory_space<vmem>>, vector<2x2xf32>,
    %cst_87 = arith.constant dense<0.000000e+00> : vector<2x1xf32>
    %106 = tpu.matmul %90, %79, %cst_87 {dimension_numbers = #tpu.dot_dimension_numbers<[1], [0], [0], [1], [0, 0, 1, 1], [], []>} : vector<2x32xf32>, vector<32x1xf32>, vector<2x1xf32> -> vector<2x1xf32>
    %107 = vector.broadcast %80 : vector<1x1xf32> to vector<2x1xf32>
    %108 = arith.addf %106, %107 : vector<2x1xf32>
    %c0_88 = arith.constant 0 : index
    %c0_89 = arith.constant 0 : index
    %109 = vector.load %arg32[%c0_88, %c0_89] : memref<2x1xf32, #tpu.memory_space<vmem>>, vector<2x1xf32>
    tpu.vector_store %arg32[%c0_88, %c0_89], %108 {strides = array<i32>} : memref<2x1xf32, #tpu.memory_space<vmem>>, vector<2x1xf32>,
    %c0_90 = arith.constant 0 : index
    %c0_91 = arith.constant 0 : index
    %c0_92 = arith.constant 0 : index
    %110 = vector.load %arg33[%c0_90, %c0_91, %c0_92] : memref<1x2x32xf32, #tpu.memory_space<vmem>>, vector<1x2x32xf32>
    %111 = vector.shape_cast %110 : vector<1x2x32xf32> to vector<2x32xf32>
    %112 = vector.shape_cast %70 : vector<2x32xf32> to vector<1x2x32xf32>
    tpu.vector_store %arg33[%c0_90, %c0_91, %c0_92], %112 {strides = array<i32>} : memref<1x2x32xf32, #tpu.memory_space<vmem>>, vector<1x2x32xf32>,
    return
  }
}

</mosaic_0001>

<bundles_post_ra>
// kernel: model_forward.4
= control target key start
LH: loop header
LB: loop body
LE: loop exit
PB: predicated region body
PF: predicated region fallthrough
CT: control target
= control target key end

     0   :  { %vm30_vm0 = vcmask 1043456   ;;  %v135_v0 = vmov 0.0   ;;  %vm136_vm1 = vmmov 0   ;;  %v137_v3 = vmov 0   ;;  %s182_s0 = inlined_call_operand.vmem [shape: f32[36,128], index: 0, kind: input, shape index: {}]   ;;  %s183_s2 = inlined_call_operand.vmem [shape: f32[8,1], index: 2, kind: input, shape index: {}]   ;;  %s184_s1 = inlined_call_operand.vmem [shape: f32[8,36], index: 1, kind: input, shape index: {}]   ;;  %s185_s3 = inlined_call_operand.vmem [shape: f32[8,128], index: 3, kind: output, shape index: {}]  }
   0x1   :  { %118 = vmatprep.subr.mxu0 %v135_v0  ;;  %v19_v1 = vld [vmem:[%s182_s0 + $0x20] sm:$0xf]  ;;  %v18_v2 = vld [vmem:[%s182_s0 + $0x18] sm:$0xff]  ;;  %128 = vmatprep.mubr.msk.f32.mxu0 %vm136_vm1, %v135_v0  ;;  %v17_v4 = vld [vmem:[%s182_s0 + $0x10] sm:$0xff]  ;;  %vm26_vm2 = vcmask 293888  }
   0x2   :  { %119 = vmatpush3.msk.msra.mxu0 %vm30_vm0, %v19_v1  ;;  %134 = vset.pattern.permute.xlu0 %v137_v3  ;;  %v20_v5 = vld [vmem:[%s183_s2] sm:$0xff]  ;;  %v16_v6 = vld [vmem:[%s182_s0 + $0x8] sm:$0xff] }
   0x3   :  { %120 = vmatprep.subr.mxu0 %v135_v0  ;;  %23 = vperm.xlu0 %134, %v20_v5   ;;  %v15_v7 = vld [vmem:[%s182_s0] sm:$0xff] }
   0x4   :  { %121 = vmatpush3.msra.mxu0 %v18_v2  ;;  %v14_v8 = vld [vmem:[%s184_s1] sm:$0xff] }
   0x5   :  { %122 = vmatprep.subr.mxu0 %v135_v0 }
   0x6   :  { %123 = vmatpush3.msra.mxu0 %v17_v4 }
   0x7   :  { %124 = vmatprep.subr.mxu0 %v135_v0 }
   0x8   :  { %125 = vmatpush3.msra.mxu0 %v16_v6 }
   0x9   :  { %126 = vmatprep.subr.mxu0 %v135_v0 }
   0xa   :  { %127 = vmatpush3.msra.mxu0 %v15_v7 }
   0xb   :  { %129 = vmatmul.mubr.msk.f32.vlgmr.msra.gmra.mxu0 %vm26_vm2, %v14_v8 }
  0x7e   :  { %v24_v9 = vpop.permute.xlu0 %23 }
  0xcb   :  { %v100_v10 = vpop.f32.mrf.mxu0 }
  0xcc   :  { %v101_v11 = vadd.f32 %v100_v10, %v24_v9 }
  0xcd   :  { %v130_v12 = vpop.f32.mrf.mxu0 }
  0xce   :  { %v104_v13 = vmax.f32 %v101_v11, 0.0 }
  0xd0   :  { %105 = vst [vmem:[%s185_s3] sm:$0xff] %v104_v13 }

// kernel: model_forward.5
= control target key start
LH: loop header
LB: loop body
LE: loop exit
PB: predicated region body
PF: predicated region fallthrough
CT: control target
= control target key end

     0   :  { %v147_v0 = vmov 0.0   ;;  %vm148_vm0 = vmmov 0   ;;  %v149_v3 = vmov 0   ;;  %vm30_vm1 = vcmask 588800   ;;  %s206_s0 = inlined_call_operand.vmem [shape: f32[72,32], index: 0, kind: input, shape index: {}]   ;;  %s207_s2 = inlined_call_operand.vmem [shape: f32[8,1], index: 2, kind: input, shape index: {}]   ;;  %s208_s1 = inlined_call_operand.vmem [shape: f32[8,72], index: 1, kind: input, shape index: {}]   ;;  %s209_s3 = inlined_call_operand.vmem [shape: f32[8,32], index: 3, kind: output, shape index: {}]  }
   0x1   :  { %122 = vmatprep.subr.mxu0 %v147_v0  ;;  %v23_v1 = vld [vmem:[%s206_s0 + $0x40] sm:$0xff]  ;;  %v22_v2 = vld [vmem:[%s206_s0 + $0x38] sm:$0xff]  ;;  %140 = vmatprep.mubr.msk.f32.mxu0 %vm148_vm0, %v147_v0  ;;  %v21_v4 = vld [vmem:[%s206_s0 + $0x30] sm:$0xff]  ;;  %vm105_vm2 = vcmask 261120  }
   0x2   :  { %123 = vmatpush3.msra.mxu0 %v23_v1  ;;  %146 = vset.pattern.permute.xlu0 %v149_v3  ;;  %v24_v5 = vld [vmem:[%s207_s2] sm:$0xff]  ;;  %v20_v6 = vld [vmem:[%s206_s0 + $0x28] sm:$0xff]  ;;  %v18_v8 = vld [vmem:[%s206_s0 + $0x18] sm:$0xff] }
   0x3   :  { %124 = vmatprep.subr.mxu0 %v147_v0  ;;  %27 = vperm.xlu0 %146, %v24_v5   ;;  %v19_v7 = vld [vmem:[%s206_s0 + $0x20] sm:$0xff]  ;;  %v17_v9 = vld [vmem:[%s206_s0 + $0x10] sm:$0xff]  ;;  %v16_v10 = vld [vmem:[%s206_s0 + $0x8] sm:$0xff] }
   0x4   :  { %125 = vmatpush3.msra.mxu0 %v22_v2  ;;  %v15_v11 = vld [vmem:[%s206_s0] sm:$0xff] }
   0x5   :  { %126 = vmatprep.subr.mxu0 %v147_v0  ;;  %v14_v12 = vld [vmem:[%s208_s1] sm:$0xff] }
   0x6   :  { %127 = vmatpush3.msra.mxu0 %v21_v4 }
   0x7   :  { %128 = vmatprep.subr.mxu0 %v147_v0 }
   0x8   :  { %129 = vmatpush3.msra.mxu0 %v20_v6 }
   0x9   :  { %130 = vmatprep.subr.mxu0 %v147_v0 }
   0xa   :  { %131 = vmatpush3.msra.mxu0 %v19_v7 }
   0xb   :  { %132 = vmatprep.subr.mxu0 %v147_v0 }
   0xc   :  { %133 = vmatpush3.msra.mxu0 %v18_v8 }
   0xd   :  { %134 = vmatprep.subr.mxu0 %v147_v0 }
   0xe   :  { %135 = vmatpush3.msra.mxu0 %v17_v9 }
   0xf   :  { %136 = vmatprep.subr.mxu0 %v147_v0 }
  0x10   :  { %137 = vmatpush3.msra.mxu0 %v16_v10 }
  0x11   :  { %138 = vmatprep.subr.mxu0 %v147_v0 }
  0x12   :  { %139 = vmatpush3.msra.mxu0 %v15_v11 }
  0x13   :  { %141 = vmatmul.mubr.msk.f32.vlgmr.msra.gmra.mxu0 %vm30_vm1, %v14_v12 }
  0x7e   :  { %v28_v13 = vpop.permute.xlu0 %27 }
  0xd3   :  { %v100_v14 = vpop.f32.mrf.mxu0 }
  0xd4   :  { %v101_v15 = vadd.f32 %v100_v14, %v28_v13 }
  0xd5   :  { %v142_v16 = vpop.f32.mrf.mxu0 }
  0xd6   :  { %v104_v17 = vmax.f32 %v101_v15, 0.0 }
  0xd8   :  { %106 = vst.msk [vmem:[%s209_s3] sm:$0xff] %vm105_vm2, %v104_v17 }

// kernel: model_forward.6
= control target key start
LH: loop header
LB: loop body
LE: loop exit
PB: predicated region body
PF: predicated region fallthrough
CT: control target
= control target key end

     0   :  { %vm30_vm0 = vcmask 1043456   ;;  %v136_v0 = vmov 0.0   ;;  %vm137_vm1 = vmmov 0   ;;  %v138_v3 = vmov 0   ;;  %s183_s0 = inlined_call_operand.vmem [shape: f32[36,32], index: 0, kind: input, shape index: {}]   ;;  %s184_s2 = inlined_call_operand.vmem [shape: f32[8,1], index: 2, kind: input, shape index: {}]   ;;  %s185_s1 = inlined_call_operand.vmem [shape: f32[8,36], index: 1, kind: input, shape index: {}]   ;;  %s186_s3 = inlined_call_operand.vmem [shape: f32[8,32], index: 3, kind: output, shape index: {}]  }
   0x1   :  { %119 = vmatprep.subr.mxu0 %v136_v0  ;;  %v19_v1 = vld [vmem:[%s183_s0 + $0x20] sm:$0xf]  ;;  %v18_v2 = vld [vmem:[%s183_s0 + $0x18] sm:$0xff]  ;;  %129 = vmatprep.mubr.msk.f32.mxu0 %vm137_vm1, %v136_v0  ;;  %v17_v4 = vld [vmem:[%s183_s0 + $0x10] sm:$0xff]  ;;  %vm26_vm2 = vcmask 293888   ;;  %vm105_vm3 = vcmask 261120  }
   0x2   :  { %120 = vmatpush3.msk.msra.mxu0 %vm30_vm0, %v19_v1  ;;  %135 = vset.pattern.permute.xlu0 %v138_v3  ;;  %v20_v5 = vld [vmem:[%s184_s2] sm:$0xff]  ;;  %v16_v6 = vld [vmem:[%s183_s0 + $0x8] sm:$0xff] }
   0x3   :  { %121 = vmatprep.subr.mxu0 %v136_v0  ;;  %23 = vperm.xlu0 %135, %v20_v5   ;;  %v15_v7 = vld [vmem:[%s183_s0] sm:$0xff] }
   0x4   :  { %122 = vmatpush3.msra.mxu0 %v18_v2  ;;  %v14_v8 = vld [vmem:[%s185_s1] sm:$0xff] }
   0x5   :  { %123 = vmatprep.subr.mxu0 %v136_v0 }
   0x6   :  { %124 = vmatpush3.msra.mxu0 %v17_v4 }
   0x7   :  { %125 = vmatprep.subr.mxu0 %v136_v0 }
   0x8   :  { %126 = vmatpush3.msra.mxu0 %v16_v6 }
   0x9   :  { %127 = vmatprep.subr.mxu0 %v136_v0 }
   0xa   :  { %128 = vmatpush3.msra.mxu0 %v15_v7 }
   0xb   :  { %130 = vmatmul.mubr.msk.f32.vlgmr.msra.gmra.mxu0 %vm26_vm2, %v14_v8 }
  0x7e   :  { %v24_v9 = vpop.permute.xlu0 %23 }
  0xcb   :  { %v100_v10 = vpop.f32.mrf.mxu0 }
  0xcc   :  { %v101_v11 = vadd.f32 %v100_v10, %v24_v9 }
  0xcd   :  { %v131_v12 = vpop.f32.mrf.mxu0 }
  0xce   :  { %v104_v13 = vmax.f32 %v101_v11, 0.0 }
  0xd0   :  { %106 = vst.msk [vmem:[%s186_s3] sm:$0xff] %vm105_vm3, %v104_v13 }

// kernel: model_forward.7
= control target key start
LH: loop header
LB: loop body
LE: loop exit
PB: predicated region body
PF: predicated region fallthrough
CT: control target
= control target key end

     0   :  { %s1959_s6 = smov 1   ;;  %s1960_s10 = smov 2   ;;  %s2392_s0 = inlined_call_operand.smem [shape: u32[34], index: -1, kind: input, shape index: {}] }
   0x1   :  { %s2004_s5 = sld [smem:[%s2392_s0]]   ;;  %s1961_s14 = smov 3  }
   0x2   :  { %s2009_s9 = sld [smem:[%s2392_s0 + %s1959_s6]]   ;;  %s1962_s18 = smov 4  }
   0x3   :  { %s2014_s13 = sld [smem:[%s2392_s0 + %s1960_s10]]   ;;  %s1963_s22 = smov 5  }
   0x4   :  { %s2019_s17 = sld [smem:[%s2392_s0 + %s1961_s14]]   ;;  %s1964_s26 = smov 6  }
   0x5   :  { %s2024_s21 = sld [smem:[%s2392_s0 + %s1962_s18]]   ;;  %s1965_s30 = smov 7  }
   0x6   :  { %s2029_s25 = sld [smem:[%s2392_s0 + %s1963_s22]]   ;;  %s1966_s4 = smov 8  }
   0x7   :  { %s2034_s29 = sld [smem:[%s2392_s0 + %s1964_s26]]   ;;  %s1967_s10 = smov 9  }
   0x8   :  { %s2039_s3 = sld [smem:[%s2392_s0 + %s1965_s30]]   ;;  %s1968_s15 = smov 10  }
   0x9   :  { %2400 = sst [smem:[#allocation9_spill]] %s2014_s13  ;;  %s1969_s20 = smov 11  }
   0xa   :  { %s2044_s8 = sld [smem:[%s2392_s0 + %s1966_s4]]   ;;  %s1970_s26 = smov 12  }
   0xb   :  { %s2049_s14 = sld [smem:[%s2392_s0 + %s1967_s10]]   ;;  %s1971_s1 = smov 13  }
   0xc   :  { %s2054_s19 = sld [smem:[%s2392_s0 + %s1968_s15]]   ;;  %s1972_s7 = smov 14  }
   0xd   :  { %s2059_s24 = sld [smem:[%s2392_s0 + %s1969_s20]]   ;;  %s1973_s15 = smov 15  }
   0xe   :  { %s2064_s30 = sld [smem:[%s2392_s0 + %s1970_s26]]   ;;  %s1974_s22 = smov 16  }
   0xf   :  { %s2069_s6 = sld [smem:[%s2392_s0 + %s1971_s1]]   ;;  %s1975_s28 = smov 17  }
  0x10   :  { %s2074_s12 = sld [smem:[%s2392_s0 + %s1972_s7]]   ;;  %s1976_s7 = smov 18  }
  0x11   :  { %s2079_s20 = sld [smem:[%s2392_s0 + %s1973_s15]]   ;;  %s1977_s15 = smov 19  }
  0x12   :  { %2401 = sst [smem:[#allocation10_spill]] %s2054_s19  ;;  %s1988_s10 = smov 30  }
  0x13   :  { %s2084_s27 = sld [smem:[%s2392_s0 + %s1974_s22]]   ;;  %s1978_s22 = smov 20  }
  0x14   :  { %s2089_s4 = sld [smem:[%s2392_s0 + %s1975_s28]]   ;;  %s1979_s28 = smov 21  }
  0x15   :  { %2402 = sst [smem:[#allocation11_spill]] %s2069_s6  ;;  %s1989_s16 = smov 31  }
  0x16   :  { %2403 = sst [smem:[#allocation12_spill]] %s2074_s12  ;;  %s1990_s23 = smov 32  }
  0x17   :  { %s2094_s12 = sld [smem:[%s2392_s0 + %s1976_s7]]   ;;  %s1980_s7 = smov 22  }
  0x18   :  { %s2099_s19 = sld [smem:[%s2392_s0 + %s1977_s15]]   ;;  %s1981_s15 = smov 23  }
  0x19   :  { %s2104_s13 = sld [smem:[%s2392_s0 + %s1978_s22]]   ;;  %s1982_s22 = smov 24  }
  0x1a   :  { %2404 = sst [smem:[#allocation13_spill]] %s2089_s4  ;;  %s1991_s1 = smov 33  }
  0x1b   :  { %s2109_s4 = sld [smem:[%s2392_s0 + %s1979_s28]]   ;;  %s1983_s28 = smov 25  }
  0x1c   :  { %s2167_s6 = sld [smem:[%s2392_s0 + %s1991_s1]]  }
  0x1d   :  { %2405 = sst [smem:[#allocation14_spill]] %s2094_s12 }
  0x1e   :  { %2406 = sst [smem:[#allocation15_spill]] %s2099_s19 }
  0x1f   :  { %2407 = sst [smem:[#allocation16_spill]] %s2104_s13 }
  0x20   :  { %s2114_s12 = sld [smem:[%s2392_s0 + %s1980_s7]]   ;;  %s1984_s7 = smov 26  }
  0x21   :  { %2408 = sst [smem:[#allocation17_spill]] %s2109_s4 }
  0x22   :  { %s2119_s19 = sld [smem:[%s2392_s0 + %s1981_s15]]   ;;  %s1985_s15 = smov 27  }
  0x23   :  { %s2124_s13 = sld [smem:[%s2392_s0 + %s1982_s22]]   ;;  %s1986_s22 = smov 28  }
  0x24   :  { %s2129_s4 = sld [smem:[%s2392_s0 + %s1983_s28]]   ;;  %s1987_s28 = smov 29  }
  0x26   :  { %2409 = sst [smem:[#allocation18_spill]] %s2114_s12 }
  0x27   :  { %s2134_s12 = sld [smem:[%s2392_s0 + %s1984_s7]]  }
  0x28   :  { %2410 = sst [smem:[#allocation19_spill]] %s2119_s19 }
  0x29   :  { %2411 = sst [smem:[#allocation20_spill]] %s2124_s13 }
  0x2a   :  { %2412 = sst [smem:[#allocation21_spill]] %s2129_s4 }
  0x2b   :  { %s2139_s19 = sld [smem:[%s2392_s0 + %s1985_s15]]  }
  0x2c   :  { %s2144_s13 = sld [smem:[%s2392_s0 + %s1986_s22]]  }
  0x2d   :  { %2413 = sst [smem:[#allocation22_spill]] %s2134_s12 }
  0x2e   :  { %s1539_s4 = sld [smem:[%s2392_s0 + %s1987_s28]]  }
  0x2f   :  { %s2152_s12 = sld [smem:[%s2392_s0 + %s1988_s10]]  }
  0x31   :  { %2414 = sst [smem:[#allocation23_spill]] %s2139_s19 }
  0x32   :  { %2415 = sst [smem:[#allocation24_spill]] %s2144_s13 }
  0x33   :  { %s2157_s19 = sld [smem:[%s2392_s0 + %s1989_s16]]  }
  0x34   :  { %s2162_s13 = sld [smem:[%s2392_s0 + %s1990_s23]]   ;;  %v73_v0 = vstv %s1539_s4 }
  0x35   :  { %74 = vst [vmem:[#allocation2] sm:$0x1] %v73_v0 }
  0x36   :  { %75 = vsyncpa [#allocation4], 0  ;;  %v154_v1 = vld [vmem:[%s2019_s17 + $0x78] sm:$0xff]  ;;  %v1992_v3 = vmov 0.0   ;;  %v153_v4 = vld [vmem:[%s2019_s17 + $0x70] sm:$0xff] }
  0x37   :  { %v171_v2 = vld [vmem:[%s2029_s25 + $0x78] sm:$0xff]  ;;  %1664 = vmatprep.subr.mxu0 %v1992_v3  ;;  %1699 = vmatprep.subr.mxu1 %v1992_v3  ;;  %v170_v5 = vld [vmem:[%s2029_s25 + $0x70] sm:$0xff]  ;;  %v152_v6 = vld [vmem:[%s2019_s17 + $0x68] sm:$0xff] }
  0x38   :  { %1665 = vmatpush3.msra.mxu0 %v154_v1  ;;  %1700 = vmatpush3.msra.mxu1 %v171_v2  ;;  %v169_v7 = vld [vmem:[%s2029_s25 + $0x68] sm:$0xff]  ;;  %v151_v8 = vld [vmem:[%s2019_s17 + $0x60] sm:$0xff]  ;;  %v150_v10 = vld [vmem:[%s2019_s17 + $0x58] sm:$0xff] }
  0x39   :  { %1666 = vmatprep.subr.mxu0 %v1992_v3  ;;  %1701 = vmatprep.subr.mxu1 %v1992_v3  ;;  %v168_v9 = vld [vmem:[%s2029_s25 + $0x60] sm:$0xff]  ;;  %v167_v11 = vld [vmem:[%s2029_s25 + $0x58] sm:$0xff]  ;;  %v149_v12 = vld [vmem:[%s2019_s17 + $0x50] sm:$0xff] }
  0x3a   :  { %1667 = vmatpush3.msra.mxu0 %v153_v4  ;;  %1702 = vmatpush3.msra.mxu1 %v170_v5  ;;  %v166_v13 = vld [vmem:[%s2029_s25 + $0x50] sm:$0xff]  ;;  %v148_v14 = vld [vmem:[%s2019_s17 + $0x48] sm:$0xff] }
  0x3b   :  { %1668 = vmatprep.subr.mxu0 %v1992_v3  ;;  %1703 = vmatprep.subr.mxu1 %v1992_v3  ;;  %v165_v15 = vld [vmem:[%s2029_s25 + $0x48] sm:$0xff] }
  0x3c   :  { %1669 = vmatpush3.msra.mxu0 %v152_v6  ;;  %1704 = vmatpush3.msra.mxu1 %v169_v7 }
  0x3d   :  { %1670 = vmatprep.subr.mxu0 %v1992_v3  ;;  %1705 = vmatprep.subr.mxu1 %v1992_v3 }
  0x3e   :  { %1671 = vmatpush3.msra.mxu0 %v151_v8  ;;  %1706 = vmatpush3.msra.mxu1 %v168_v9 }
  0x3f   :  { %1672 = vmatprep.subr.mxu0 %v1992_v3  ;;  %1707 = vmatprep.subr.mxu1 %v1992_v3 }
  0x40   :  { %1673 = vmatpush3.msra.mxu0 %v150_v10  ;;  %1708 = vmatpush3.msra.mxu1 %v167_v11 }
  0x41   :  { %1674 = vmatprep.subr.mxu0 %v1992_v3  ;;  %1709 = vmatprep.subr.mxu1 %v1992_v3 }
  0x42   :  { %76 = vsyncpa [#allocation6], 0  ;;  %1675 = vmatpush3.msra.mxu0 %v149_v12  ;;  %1710 = vmatpush3.msra.mxu1 %v166_v13  ;;  %v147_v16 = vld [vmem:[%s2019_s17 + $0x40] sm:$0xff]  ;;  %v146_v18 = vld [vmem:[%s2019_s17 + $0x38] sm:$0xff]  ;;  %vm1993_vm0 = vmmov 0   ;;  %vm356_vm1 = vcmask 130048  }
  0x43   :  { %1676 = vmatprep.subr.mxu0 %v1992_v3  ;;  %1711 = vmatprep.subr.mxu1 %v1992_v3  ;;  %v164_v17 = vld [vmem:[%s2029_s25 + $0x40] sm:$0xff]  ;;  %v163_v19 = vld [vmem:[%s2029_s25 + $0x38] sm:$0xff]  ;;  %v145_v20 = vld [vmem:[%s2019_s17 + $0x30] sm:$0xff]  ;;  %s2416_s0 = sld [smem:[#allocation11_spill]]  ;;  %vm783_vm2 = vcmask 261120   ;;  %vm1473_vm3 = vcmask 254976  }
  0x44   :  { %1677 = vmatpush3.msra.mxu0 %v148_v14  ;;  %1712 = vmatpush3.msra.mxu1 %v165_v15  ;;  %v162_v21 = vld [vmem:[%s2029_s25 + $0x30] sm:$0xff]  ;;  %v144_v22 = vld [vmem:[%s2019_s17 + $0x28] sm:$0xff]  ;;  %v143_v24 = vld [vmem:[%s2019_s17 + $0x20] sm:$0xff]  ;;  %s2431_s4 = sld [smem:[#allocation23_spill]]  ;;  %s1994_s10 = smov [#allocation3]   ;;  %vm1306_vm4 = vcmask 9216  }
  0x45   :  { %1678 = vmatprep.subr.mxu0 %v1992_v3  ;;  %1713 = vmatprep.subr.mxu1 %v1992_v3  ;;  %v161_v23 = vld [vmem:[%s2029_s25 + $0x28] sm:$0xff]  ;;  %v160_v25 = vld [vmem:[%s2029_s25 + $0x20] sm:$0xff]  ;;  %v142_v26 = vld [vmem:[%s2019_s17 + $0x18] sm:$0xff]  ;;  %s1481_s7 = sshll.u32 %s1994_s10, 4  ;;  %s1482_s7 = int_to_ptr.vmem [resolvable:$true] %s1481_s7 }
  0x46   :  { %1679 = vmatpush3.msra.mxu0 %v147_v16  ;;  %1714 = vmatpush3.msra.mxu1 %v164_v17  ;;  %v159_v27 = vld [vmem:[%s2029_s25 + $0x18] sm:$0xff]  ;;  %v141_v28 = vld [vmem:[%s2019_s17 + $0x10] sm:$0xff]  ;;  %v140_v30 = vld [vmem:[%s2019_s17 + $0x8] sm:$0xff]  ;;  %s1915_s11 = scalar_lea.vmem %s1482_s7, 32  ;;  %p1920_p1 = scmp.lt.s32.totalorder %s1482_s7, %s1482_s7 }
  0x47   :  { %1680 = vmatprep.subr.mxu0 %v1992_v3  ;;  %1715 = vmatprep.subr.mxu1 %v1992_v3  ;;  %v158_v29 = vld [vmem:[%s2029_s25 + $0x10] sm:$0xff]  ;;  %v157_v31 = vld [vmem:[%s2029_s25 + $0x8] sm:$0xff]  ;;  %v139_v32 = vld [vmem:[%s2019_s17] sm:$0xff]  ;;  %s2419_s17 = sld [smem:[#allocation16_spill]]  ;;  %p1916_p0 = scmp.ne.s32.totalorder %s1482_s7, %s1915_s11 }
  0x48   :  { %1681 = vmatpush3.msra.mxu0 %v146_v18  ;;  %1716 = vmatpush3.msra.mxu1 %v163_v19  ;;  %v156_v33 = vld [vmem:[%s2029_s25] sm:$0xff]  ;;  %v331_v36 = vld [vmem:[%s2044_s8 + $0x8] sm:$0xff]  ;;  %v335_v58 = vld [vmem:[%s2049_s14 + $0x18] sm:$0xff]  ;;  %s2421_s25 = sld [smem:[#allocation10_spill]]  ;;  %p1921_p2 = scmp.lt.s32.totalorder %s1915_s11, %s1915_s11 }
  0x49   :  { %1682 = vmatprep.subr.mxu0 %v1992_v3  ;;  %1717 = vmatprep.subr.mxu1 %v1992_v3  ;;  %v137_v34 = vld [vmem:[%s2004_s5] sm:$0x3]  ;;  %v329_v37 = vld [vmem:[%s2039_s3 + $0x8] sm:$0xff]  ;;  %v344_v59 = vld [vmem:[%s2416_s0 + $0x18] sm:$0xff]  ;;  %s2417_s5 = sld [smem:[#allocation9_spill]] }
  0x4a   :  { %1683 = vmatpush3.msra.mxu0 %v145_v20  ;;  %1718 = vmatpush3.msra.mxu1 %v162_v21  ;;  %v138_v35 = vld [vmem:[%s2009_s9] sm:$0x3]  ;;  %v340_v50 = vld [vmem:[%s2064_s30 + $0x8] sm:$0xff]  ;;  %v334_v60 = vld [vmem:[%s2049_s14 + $0x10] sm:$0xff]  ;;  %s2418_s9 = sld [smem:[#allocation13_spill]]  ;;  %p1922_p3 = por %p1921_p2, %p1920_p1 }
  0x4b   :  { %1684 = vmatprep.subr.mxu0 %v1992_v3  ;;  %1719 = vmatprep.subr.mxu1 %v1992_v3  ;;  %v330_v38 = vld [vmem:[%s2044_s8] sm:$0xff]  ;;  %v338_v51 = vld [vmem:[%s2059_s24 + $0x8] sm:$0xff]  ;;  %v343_v61 = vld [vmem:[%s2416_s0 + $0x10] sm:$0xff]  ;;  %s2424_s8 = sld [smem:[#allocation14_spill]] }
  0x4c   :  { %1685 = vmatpush3.msra.mxu0 %v144_v22  ;;  %1720 = vmatpush3.msra.mxu1 %v161_v23  ;;  %v328_v39 = vld [vmem:[%s2039_s3] sm:$0xff]  ;;  %v349_v54 = vld [vmem:[%s2084_s27 + $0x8] sm:$0xff]  ;;  %s2423_s3 = sld [smem:[#allocation15_spill]]  ;;  %p1923_p4 = pnand %p1922_p3, %p1916_p0 }
  0x4d   :  { %1686 = vmatprep.subr.mxu0 %v1992_v3  ;;  %1721 = vmatprep.subr.mxu1 %v1992_v3  ;;  %v1544_v40 = vld [vmem:[%s2024_s21] ss:$0 sm:$0xff]  ;;  %v347_v55 = vld [vmem:[%s2079_s20 + $0x8] sm:$0xff]  ;;  %s2420_s21 = sld [smem:[#allocation18_spill]]  ;;  %v1048_v8 = vld [vmem:[%s2419_s17 + $0x18] sm:$0xff] }
  0x4e   :  { %1687 = vmatpush3.msra.mxu0 %v143_v24  ;;  %1722 = vmatpush3.msra.mxu1 %v160_v25  ;;  %v1545_v41 = vld [vmem:[%s2034_s29] ss:$0 sm:$0xff]  ;;  %v333_v62 = vld [vmem:[%s2049_s14 + $0x8] sm:$0xff]  ;;  %v1047_v10 = vld [vmem:[%s2419_s17 + $0x10] sm:$0xff]  ;;  %s2422_s29 = sld [smem:[#allocation12_spill]] }
  0x4f   :  { %1688 = vmatprep.subr.mxu0 %v1992_v3  ;;  %1723 = vmatprep.subr.mxu1 %v1992_v3  ;;  %v339_v52 = vld [vmem:[%s2064_s30] sm:$0xff]  ;;  %v342_v63 = vld [vmem:[%s2416_s0 + $0x8] sm:$0xff]  ;;  %s2427_s30 = sld [smem:[#allocation17_spill]] }
  0x50   :  { %1689 = vmatpush3.msra.mxu0 %v142_v26  ;;  %1724 = vmatpush3.msra.mxu1 %v159_v27  ;;  %v337_v53 = vld [vmem:[%s2059_s24] sm:$0xff]  ;;  %v353_v4 = vld [vmem:[%s2418_s9 + $0x18] sm:$0xff]  ;;  %v352_v5 = vld [vmem:[%s2418_s9 + $0x10] sm:$0xff]  ;;  %s2426_s24 = sld [smem:[#allocation22_spill]] }
  0x51   :  { %1690 = vmatprep.subr.mxu0 %v1992_v3  ;;  %1725 = vmatprep.subr.mxu1 %v1992_v3  ;;  %v348_v56 = vld [vmem:[%s2084_s27] sm:$0xff]  ;;  %v351_v6 = vld [vmem:[%s2418_s9 + $0x8] sm:$0xff]  ;;  %s2430_s27 = sld [smem:[#allocation21_spill]] }
  0x52   :  { %1691 = vmatpush3.msra.mxu0 %v141_v28  ;;  %1726 = vmatpush3.msra.mxu1 %v158_v29  ;;  %v346_v57 = vld [vmem:[%s2079_s20] sm:$0xff]  ;;  %v1046_v12 = vld [vmem:[%s2419_s17 + $0x8] sm:$0xff]  ;;  %s2429_s20 = sld [smem:[#allocation19_spill]] }
  0x53   :  { %1692 = vmatprep.subr.mxu0 %v1992_v3  ;;  %1727 = vmatprep.subr.mxu1 %v1992_v3  ;;  %v332_v0 = vld [vmem:[%s2049_s14] sm:$0xff]  ;;  %v1053_v9 = vld [vmem:[%s2420_s21 + $0x18] sm:$0xff]  ;;  %v1052_v11 = vld [vmem:[%s2420_s21 + $0x10] sm:$0xff]  ;;  %s2425_s14 = sld [smem:[#allocation20_spill]] }
  0x54   :  { %1693 = vmatpush3.msra.mxu0 %v140_v30  ;;  %1728 = vmatpush3.msra.mxu1 %v157_v31  ;;  %v341_v1 = vld [vmem:[%s2416_s0] sm:$0xff]  ;;  %v1051_v13 = vld [vmem:[%s2420_s21 + $0x8] sm:$0xff] }
  0x55   :  { %1694 = vmatprep.subr.mxu0 %v1992_v3  ;;  %1729 = vmatprep.subr.mxu1 %v1992_v3  ;;  %v2300_v2 = vld [vmem:[%s2417_s5] sm:$0x3] }
  0x56   :  { %1695 = vmatpush3.msra.mxu0 %v139_v32  ;;  %1696 = vmatprep.mubr.msk.f32.mxu0 %vm1993_vm0, %v1992_v3  ;;  %v350_v7 = vld [vmem:[%s2418_s9] sm:$0xff] }
  0x57   :  { %1730 = vmatpush3.msra.mxu1 %v156_v33  ;;  %1731 = vmatprep.mubr.msk.f32.mxu1 %vm1993_vm0, %v1992_v3  ;;  %v1045_v14 = vld [vmem:[%s2419_s17] sm:$0xff] }
  0x58   :  { %1697 = vmatmul.mubr.f32.vlgmr.msra.gmra.mxu0 %v137_v34  ;;  %1732 = vmatmul.mubr.f32.vlgmr.msra.gmra.mxu1 %v138_v35  ;;  %v1050_v15 = vld [vmem:[%s2420_s21] sm:$0xff] }
  0x59   :  { %1734 = vmatprep.subr.mxu0 %v1992_v3  ;;  %1741 = vmatprep.subr.mxu1 %v1992_v3  ;;  %v1553_v29 = vld [vmem:[%s2421_s25] ss:$0 sm:$0xff] }
  0x5a   :  { %1738 = vmatprep.mubr.msk.f32.mxu0 %vm1993_vm0, %v1992_v3  ;;  %1745 = vmatprep.mubr.msk.f32.mxu1 %vm1993_vm0, %v1992_v3 }
  0x5b   :  { %1735 = vmatpush3.msra.mxu0 %v331_v36  ;;  %1742 = vmatpush3.msra.mxu1 %v329_v37 }
  0x5c   :  { %1736 = vmatprep.subr.mxu0 %v1992_v3  ;;  %1743 = vmatprep.subr.mxu1 %v1992_v3 }
  0x5d   :  { %1737 = vmatpush3.msra.mxu0 %v330_v38  ;;  %1744 = vmatpush3.msra.mxu1 %v328_v39  ;;  %v1556_v39 = vld [vmem:[%s2422_s29] ss:$0 sm:$0xff] }
  0x5e   :  { %1748 = vmatprep.subr.mxu0 %v1992_v3  ;;  %1755 = vmatprep.subr.mxu1 %v1992_v3 }
 0x118   :  { %v245_v42 = vpop.f32.mrf.mxu0  ;;  %v322_v43 = vpop.f32.mrf.mxu1 }
 0x119   :  { %v246_v44 = vadd.f32 %v1544_v40, %v245_v42  ;;  %v323_v45 = vadd.f32 %v1545_v41, %v322_v43 }
 0x11a   :  { %v1733_v46 = vpop.f32.mrf.mxu1  ;;  %v1698_v47 = vpop.f32.mrf.mxu0 }
 0x11b   :  { %v249_v48 = vmax.f32 %v246_v44, 0.0  ;;  %v326_v49 = vmax.f32 %v323_v45, 0.0  ;;  %v1559_v47 = vld [vmem:[%s2423_s3] ss:$0 sm:$0xff] }
 0x11d   :  { %1739 = vmatmul.mubr.msk.f32.vlgmr.msra.gmra.mxu0 %vm356_vm1, %v326_v49  ;;  %1746 = vmatmul.mubr.msk.f32.vlgmr.msra.gmra.mxu1 %vm356_vm1, %v249_v48 }
 0x11e   :  { %1749 = vmatpush3.msra.mxu0 %v340_v50  ;;  %1756 = vmatpush3.msra.mxu1 %v338_v51  ;;  %v1558_v51 = vld [vmem:[%s2424_s8] ss:$0 sm:$0xff] }
 0x11f   :  { %1750 = vmatprep.subr.mxu0 %v1992_v3  ;;  %1757 = vmatprep.subr.mxu1 %v1992_v3 }
 0x120   :  { %1751 = vmatpush3.msra.mxu0 %v339_v52  ;;  %1758 = vmatpush3.msra.mxu1 %v337_v53 }
 0x121   :  { %1752 = vmatprep.mubr.msk.f32.mxu0 %vm1993_vm0, %v1992_v3  ;;  %1759 = vmatprep.mubr.msk.f32.mxu1 %vm1993_vm0, %v1992_v3 }
 0x122   :  { %1762 = vmatprep.subr.mxu0 %v1992_v3  ;;  %1769 = vmatprep.subr.mxu1 %v1992_v3 }
 0x123   :  { %1753 = vmatmul.mubr.msk.f32.vlgmr.msra.gmra.mxu0 %vm356_vm1, %v326_v49  ;;  %1760 = vmatmul.mubr.msk.f32.vlgmr.msra.gmra.mxu1 %vm356_vm1, %v249_v48 }
 0x124   :  { %1763 = vmatpush3.msra.mxu0 %v349_v54  ;;  %1770 = vmatpush3.msra.mxu1 %v347_v55 }
 0x125   :  { %1764 = vmatprep.subr.mxu0 %v1992_v3  ;;  %1771 = vmatprep.subr.mxu1 %v1992_v3 }
 0x126   :  { %1765 = vmatpush3.msra.mxu0 %v348_v56  ;;  %1772 = vmatpush3.msra.mxu1 %v346_v57 }
 0x127   :  { %1766 = vmatprep.mubr.msk.f32.mxu0 %vm1993_vm0, %v1992_v3  ;;  %1773 = vmatprep.mubr.msk.f32.mxu1 %vm1993_vm0, %v1992_v3 }
 0x128   :  { %1776 = vmatprep.subr.mxu0 %v1992_v3  ;;  %1787 = vmatprep.subr.mxu1 %v1992_v3 }
 0x129   :  { %1767 = vmatmul.mubr.msk.f32.vlgmr.msra.gmra.mxu0 %vm356_vm1, %v326_v49  ;;  %1774 = vmatmul.mubr.msk.f32.vlgmr.msra.gmra.mxu1 %vm356_vm1, %v249_v48 }
 0x12a   :  { %1777 = vmatpush3.msra.mxu0 %v335_v58  ;;  %1788 = vmatpush3.msra.mxu1 %v344_v59 }
 0x12b   :  { %1778 = vmatprep.subr.mxu0 %v1992_v3  ;;  %1789 = vmatprep.subr.mxu1 %v1992_v3 }
 0x12c   :  { %1779 = vmatpush3.msra.mxu0 %v334_v60  ;;  %1790 = vmatpush3.msra.mxu1 %v343_v61 }
 0x12d   :  { %1780 = vmatprep.subr.mxu0 %v1992_v3  ;;  %1791 = vmatprep.subr.mxu1 %v1992_v3 }
 0x12e   :  { %1781 = vmatpush3.msra.mxu0 %v333_v62  ;;  %1792 = vmatpush3.msra.mxu1 %v342_v63  ;;  %v1058_v62 = vld [vmem:[%s2425_s14 + $0x18] sm:$0xff] }
 0x12f   :  { %1782 = vmatprep.subr.mxu0 %v1992_v3  ;;  %1793 = vmatprep.subr.mxu1 %v1992_v3  ;;  %v1063_v63 = vld [vmem:[%s2426_s24 + $0x18] sm:$0xff] }
 0x130   :  { %1783 = vmatpush3.msra.mxu0 %v332_v0  ;;  %1784 = vmatprep.mubr.msk.f32.mxu0 %vm1993_vm0, %v1992_v3  ;;  %v1057_v0 = vld [vmem:[%s2425_s14 + $0x10] sm:$0xff] }
 0x131   :  { %1794 = vmatpush3.msra.mxu1 %v341_v1  ;;  %1795 = vmatprep.mubr.msk.f32.mxu1 %vm1993_vm0, %v1992_v3  ;;  %v1062_v1 = vld [vmem:[%s2426_s24 + $0x10] sm:$0xff] }
 0x132   :  { %1785 = vmatmul.mubr.msk.f32.vlgmr.msra.gmra.mxu0 %vm783_vm2, %v2300_v2  ;;  %1796 = vmatmul.mubr.msk.f32.vlgmr.msra.gmra.mxu1 %vm783_vm2, %v2300_v2 }
 0x133   :  { %1798 = vmatprep.subr.mxu0 %v1992_v3  ;;  %1806 = vmatprep.mubr.msk.f32.mxu0 %vm1993_vm0, %v1992_v3 }
 0x134   :  { %1799 = vmatpush3.msra.mxu0 %v353_v4  ;;  %1809 = vmatprep.subr.mxu1 %v1992_v3  ;;  %v1061_v4 = vld [vmem:[%s2426_s24 + $0x8] sm:$0xff] }
 0x135   :  { %1800 = vmatprep.subr.mxu0 %v1992_v3  ;;  %1817 = vmatprep.mubr.msk.f32.mxu1 %vm1993_vm0, %v1992_v3 }
 0x136   :  { %1801 = vmatpush3.msra.mxu0 %v352_v5  ;;  %1810 = vmatpush3.msra.mxu1 %v1048_v8  ;;  %v1055_v5 = vld [vmem:[%s2425_s14] sm:$0xff] }
 0x137   :  { %1802 = vmatprep.subr.mxu0 %v1992_v3  ;;  %1811 = vmatprep.subr.mxu1 %v1992_v3 }
 0x138   :  { %1803 = vmatpush3.msra.mxu0 %v351_v6  ;;  %1812 = vmatpush3.msra.mxu1 %v1047_v10  ;;  %v1060_v6 = vld [vmem:[%s2426_s24] sm:$0xff] }
 0x139   :  { %1804 = vmatprep.subr.mxu0 %v1992_v3  ;;  %1813 = vmatprep.subr.mxu1 %v1992_v3 }
 0x13a   :  { %1805 = vmatpush3.msra.mxu0 %v350_v7  ;;  %1814 = vmatpush3.msra.mxu1 %v1046_v12  ;;  %v1561_v7 = vld [vmem:[%s2427_s30] ss:$0 sm:$0xff] }
 0x13b   :  { %1807 = vmatmul.mubr.msk.f32.vlgmr.msra.gmra.mxu0 %vm783_vm2, %v2300_v2  ;;  %1820 = vmatprep.subr.mxu0 %v1992_v3 }
 0x13c   :  { %1828 = vmatprep.mubr.msk.f32.mxu0 %vm1993_vm0, %v1992_v3  ;;  %1821 = vmatpush3.msra.mxu0 %v1053_v9 }
 0x13d   :  { %1822 = vmatprep.subr.mxu0 %v1992_v3  ;;  %1815 = vmatprep.subr.mxu1 %v1992_v3 }
 0x13e   :  { %1823 = vmatpush3.msra.mxu0 %v1052_v11  ;;  %1816 = vmatpush3.msra.mxu1 %v1045_v14 }
 0x13f   :  { %1824 = vmatprep.subr.mxu0 %v1992_v3  ;;  %1831 = vmatprep.subr.mxu1 %v1992_v3 }
 0x140   :  { %1825 = vmatpush3.msra.mxu0 %v1051_v13 }
 0x141   :  { %1826 = vmatprep.subr.mxu0 %v1992_v3 }
 0x142   :  { %1827 = vmatpush3.msra.mxu0 %v1050_v15  ;;  %v1563_v15 = vld [vmem:[%s2429_s20] ss:$0 sm:$0xff] }
 0x143   :  { %1842 = vmatprep.subr.mxu0 %v1992_v3 }
 0x1dd   :  { %v426_v16 = vpop.f32.mrf.mxu0  ;;  %v499_v17 = vpop.f32.mrf.mxu1 }
 0x1de   :  { %v500_v28 = vadd.f32 %v499_v17, %v426_v16 }
 0x1df   :  { %v1740_v18 = vpop.f32.mrf.mxu0  ;;  %v1747_v19 = vpop.f32.mrf.mxu1 }
 0x1e3   :  { %v569_v20 = vpop.f32.mrf.mxu0  ;;  %v639_v21 = vpop.f32.mrf.mxu1 }
 0x1e4   :  { %v640_v35 = vadd.f32 %v639_v21, %v569_v20  ;;  %v1565_v21 = vld [vmem:[%s2430_s27] ss:$0 sm:$0xff] }
 0x1e5   :  { %v1754_v22 = vpop.f32.mrf.mxu0  ;;  %v1761_v23 = vpop.f32.mrf.mxu1 }
 0x1e6   :  { %v1567_v22 = vld [vmem:[%s2431_s4] ss:$0 sm:$0xff] }
 0x1e9   :  { %v709_v24 = vpop.f32.mrf.mxu0  ;;  %v779_v25 = vpop.f32.mrf.mxu1 }
 0x1ea   :  { %v780_v48 = vadd.f32 %v779_v25, %v709_v24 }
 0x1eb   :  { %v1768_v26 = vpop.f32.mrf.mxu0  ;;  %v1775_v27 = vpop.f32.mrf.mxu1 }
 0x1ec   :  { %v961_v53 = vadd.f32 %v1558_v51, %v780_v48 }
 0x1f2   :  { %v853_v30 = vpop.f32.mrf.mxu0  ;;  %v937_v31 = vpop.f32.mrf.mxu1 }
 0x1f3   :  { %v857_v32 = vadd.f32 %v853_v30, %v500_v28  ;;  %v941_v38 = vadd.f32 %v937_v31, %v640_v35 }
 0x1f4   :  { %v1786_v33 = vpop.f32.mrf.mxu0  ;;  %v1797_v34 = vpop.f32.mrf.mxu1 }
 0x1f5   :  { %v864_v36 = vadd.f32 %v1553_v29, %v857_v32  ;;  %v948_v40 = vadd.f32 %v1556_v39, %v941_v38 }
 0x1f7   :  { %v1554_v37 = vmul.f32 -1.442695, %v864_v36  ;;  %v1557_v43 = vmul.f32 -1.442695, %v948_v40 }
 0x1f9   :  { %1901 = vpow2.f32 %v1554_v37 }
 0x1fa   :  { %1903 = vpow2.f32 %v1557_v43 }
 0x1fb   :  { %v1034_v41 = vpop.f32.mrf.mxu0 }
 0x1fc   :  { %v1035_v50 = vadd.f32 %v1559_v47, %v1034_v41 }
 0x1fd   :  { %v1808_v42 = vpop.f32.mrf.mxu0 }
 0x206   :  { %v1902_v44 = vpop.eup %1901 }
 0x207   :  { %v868_v45 = vadd.f32 1.0, %v1902_v44  ;;  %v1904_v46 = vpop.eup %1903 }
 0x208   :  { %v952_v49 = vadd.f32 1.0, %v1904_v46 }
 0x209   :  { %1905 = vrcp.f32 %v868_v45 }
 0x20a   :  { %1907 = vrcp.f32 %v952_v49 }
 0x216   :  { %v1906_v52 = vpop.eup %1905 }
 0x217   :  { %v1038_v54 = vmul.f32 %v1906_v52, %v1035_v50  ;;  %v1908_v56 = vpop.eup %1907 }
 0x218   :  { %v1041_v57 = vsub.f32 1.0, %v1908_v56  ;;  %v1043_v60 = vmul.f32 %v1908_v56, %v2300_v2  ;;  %v1056_v2 = vld [vmem:[%s2425_s14 + $0x8] sm:$0xff] }
 0x219   :  { %v1039_v55 = vadd.f32 %v1038_v54, %v961_v53 }
 0x21b   :  { %1909 = vtanh.f32 %v1039_v55 }
 0x228   :  { %v1910_v58 = vpop.eup %1909 }
 0x229   :  { %v1042_v59 = vmul.f32 %v1910_v58, %v1041_v57 }
 0x22b   :  { %v1044_v61 = vadd.f32 %v1043_v60, %v1042_v59 }
 0x22d   :  { %1818 = vmatmul.mubr.msk.f32.vlgmr.msra.gmra.mxu1 %vm783_vm2, %v1044_v61  ;;  %1474 = vst.msk [vmem:[%s2167_s6] sm:$0x3] %vm1473_vm3, %v1044_v61  ;;  %1829 = vmatmul.mubr.msk.f32.vlgmr.msra.gmra.mxu0 %vm783_vm2, %v1044_v61  ;;  %s2428_s6 = sld [smem:[#allocation24_spill]] }
 0x22e   :  { %1832 = vmatpush3.msra.mxu1 %v1058_v62  ;;  %1843 = vmatpush3.msra.mxu0 %v1063_v63 }
 0x22f   :  { %1833 = vmatprep.subr.mxu1 %v1992_v3  ;;  %1844 = vmatprep.subr.mxu0 %v1992_v3 }
 0x230   :  { %1834 = vmatpush3.msra.mxu1 %v1057_v0  ;;  %1839 = vmatprep.mubr.msk.f32.mxu1 %vm1993_vm0, %v1992_v3 }
 0x231   :  { %1835 = vmatprep.subr.mxu1 %v1992_v3  ;;  %1850 = vmatprep.mubr.msk.f32.mxu0 %vm1993_vm0, %v1992_v3 }
 0x232   :  { %1845 = vmatpush3.msra.mxu0 %v1062_v1  ;;  %1836 = vmatpush3.msra.mxu1 %v1056_v2 }
 0x233   :  { %1846 = vmatprep.subr.mxu0 %v1992_v3  ;;  %1837 = vmatprep.subr.mxu1 %v1992_v3  ;;  %v1068_v14 = vld [vmem:[%s2428_s6 + $0x18] sm:$0xff]  ;;  %v1067_v16 = vld [vmem:[%s2428_s6 + $0x10] sm:$0xff]  ;;  %v1066_v18 = vld [vmem:[%s2428_s6 + $0x8] sm:$0xff] }
 0x234   :  { %1847 = vmatpush3.msra.mxu0 %v1061_v4  ;;  %1838 = vmatpush3.msra.mxu1 %v1055_v5  ;;  %v1065_v19 = vld [vmem:[%s2428_s6] sm:$0xff] }
 0x235   :  { %1848 = vmatprep.subr.mxu0 %v1992_v3  ;;  %1853 = vmatprep.subr.mxu1 %v1992_v3 }
 0x236   :  { %1849 = vmatpush3.msra.mxu0 %v1060_v6 }
 0x2ed   :  { %v1145_v8 = vpop.f32.mrf.mxu1  ;;  %v1222_v9 = vpop.f32.mrf.mxu0 }
 0x2ee   :  { %v1146_v10 = vadd.f32 %v1561_v7, %v1145_v8  ;;  %v1223_v17 = vadd.f32 %v1563_v15, %v1222_v9 }
 0x2ef   :  { %v1819_v11 = vpop.f32.mrf.mxu1  ;;  %v1830_v12 = vpop.f32.mrf.mxu0 }
 0x2f0   :  { %v1149_v13 = vmax.f32 %v1146_v10, 0.0  ;;  %v1226_v20 = vmax.f32 %v1223_v17, 0.0 }
 0x2f2   :  { %1840 = vmatmul.mubr.msk.f32.vlgmr.msra.gmra.mxu1 %vm783_vm2, %v1149_v13  ;;  %1851 = vmatmul.mubr.msk.f32.vlgmr.msra.gmra.mxu0 %vm783_vm2, %v1149_v13 }
 0x2f3   :  { %1854 = vmatpush3.msra.mxu1 %v1068_v14  ;;  %1861 = vmatprep.mubr.msk.f32.mxu1 %vm1993_vm0, %v1992_v3 }
 0x2f4   :  { %1855 = vmatprep.subr.mxu1 %v1992_v3 }
 0x2f5   :  { %1856 = vmatpush3.msra.mxu1 %v1067_v16 }
 0x2f6   :  { %1857 = vmatprep.subr.mxu1 %v1992_v3 }
 0x2f7   :  { %1858 = vmatpush3.msra.mxu1 %v1066_v18 }
 0x2f8   :  { %1859 = vmatprep.subr.mxu1 %v1992_v3 }
 0x2f9   :  { %1860 = vmatpush3.msra.mxu1 %v1065_v19 }
 0x2fa   :  { %1862 = vmatmul.mubr.msk.f32.vlgmr.msra.gmra.mxu1 %vm783_vm2, %v1226_v20 }
 0x3b2   :  { %v1302_v23 = vpop.f32.mrf.mxu1  ;;  %v1380_v24 = vpop.f32.mrf.mxu0 }
 0x3b3   :  { %v1303_v25 = vadd.f32 %v1565_v21, %v1302_v23  ;;  %v1381_v26 = vadd.f32 %v1567_v22, %v1380_v24 }
 0x3b4   :  { %v1841_v27 = vpop.f32.mrf.mxu1  ;;  %v1852_v28 = vpop.f32.mrf.mxu0 }
 0x3b5   :  { %v1569_v29 = vmul.f32 -1.442695, %v1381_v26  ;;  %1307 = vst.msk [vmem:[#allocation3] sm:$0x3] %vm1306_vm4, %v1303_v25 }
 0x3b6   :  { %1926 = shalt.err (!%p1923_p4)
}
 0x3b7   :  { %1484 = dma.vmem_to_hbm [thread:$0]  %s1482_s7, 32, %s2152_s12, [#allocation4]   ;;  %1911 = vpow2.f32 %v1569_v29  ;;  %v1570_v3 = vld [vmem:[#allocation2] ss:$0 sm:$0xff]  ;;  %vm1471_vm5 = vcmask 1024  }
 0x3b8   :  { %s1995_s16 = smov [#allocation5]  }
 0x3b9   :  { %s1491_s15 = sshll.u32 %s1995_s16, 4  ;;  %s1492_s15 = int_to_ptr.vmem [resolvable:$true] %s1491_s15 }
 0x3ba   :  { %v1467_v30 = vpop.f32.mrf.mxu1  ;;  %s1935_s18 = scalar_lea.vmem %s1492_s15, 32  ;;  %p1940_p6 = scmp.lt.s32.totalorder %s1492_s15, %s1492_s15 }
 0x3bb   :  { %v1468_v31 = vadd.f32 %v1570_v3, %v1467_v30  ;;  %p1936_p5 = scmp.ne.s32.totalorder %s1492_s15, %s1935_s18  ;;  %p1941_p7 = scmp.lt.s32.totalorder %s1935_s18, %s1935_s18 }
 0x3bc   :  { %v1863_v32 = vpop.f32.mrf.mxu1 }
 0x3bd   :  { %1472 = vst.msk [vmem:[%s2162_s13] sm:$0x3] %vm1471_vm5, %v1468_v31  ;;  %p1942_p8 = por %p1941_p7, %p1940_p6 }
 0x3bf   :  { %p1943_p9 = pnand %p1942_p8, %p1936_p5 }
 0x3c4   :  { %v1912_v33 = vpop.eup %1911 }
 0x3c5   :  { %v1387_v34 = vadd.f32 1.0, %v1912_v33 }
 0x3c7   :  { %1913 = vrcp.f32 %v1387_v34 }
 0x3d4   :  { %v1914_v35 = vpop.eup %1913 }
 0x3d5   :  { %v1390_v36 = vadd.f32 1e-05, %v1914_v35 }
 0x3d7   :  { %1391 = vst.msk [vmem:[#allocation5] sm:$0x3] %vm1306_vm4, %v1390_v36 }
 0x3d8   :  { %1946 = shalt.err (!%p1943_p9)
}
 0x3d9   :  { %1494 = dma.vmem_to_hbm [thread:$0]  %s1492_s15, 32, %s2157_s19, [#allocation6]  }
 0x3da   :  { %1955 = dma.done.wait [#allocation4], 32  }
 0x3db   :  { %1956 = vsyncadd [#allocation4], 4294967264 }
 0x3dc   :  { %1957 = dma.done.wait [#allocation6], 32  }
 0x3dd   :  { %1958 = vsyncadd [#allocation6], 4294967264 }
 0x3de   :  { %1509 = vsyncpa [#allocation4], 1 }
 0x3df   :  { %1510 = vsyncpa [#allocation6], 1 }

</bundles_post_ra>
